<compile_context>
chip_gen: v6e
topology: v6e:2x2x1
jax: 0.10.0
libtpu: 0.0.40
codegen_flags: <defaults>
</compile_context>

<pallas_src>
import functools

import jax
import jax.numpy as jnp
from jax import lax
from jax.experimental import pallas as pl
from jax.experimental.pallas import tpu as pltpu

LN_EPS = 1e-12  # BERT LayerNorm default


def bert_output_kernel(x_ref, w_ref, b_ref, res_ref, gamma_ref, beta_ref, o_ref, *, n_features):
    """Fused: LayerNorm((x @ W) + b + residual) on one row tile."""
    # bf16 MXU inputs, f32 accumulation.
    x = x_ref[...].astype(jnp.bfloat16)
    h = jnp.dot(x, w_ref[...], preferred_element_type=jnp.float32)
    h = h + b_ref[...].astype(jnp.float32)           # bias (1, N) broadcasts over rows
    # TODO(synk): dropout is identity in eval mode; training-mode dropout not implemented.
    h = h + res_ref[...].astype(jnp.float32)         # residual add

    # Single-pass LayerNorm over the hidden dim (all f32).
    inv_n = jnp.float32(1.0 / n_features)
    s1 = jnp.sum(h, axis=-1, keepdims=True)
    s2 = jnp.sum(h * h, axis=-1, keepdims=True)
    mean = s1 * inv_n
    var = jnp.maximum(s2 * inv_n - mean * mean, 0.0)  # clamp: cancellation can go slightly negative
    inv = lax.rsqrt(var + LN_EPS)
    y = (h - mean) * inv
    y = y * gamma_ref[...].astype(jnp.float32) + beta_ref[...].astype(jnp.float32)
    o_ref[...] = y.astype(o_ref.dtype)


def _round_up(v, m):
    return ((v + m - 1) // m) * m


def bert_output(hidden_states, input_tensor, w_cat, b_cat, ln_gamma, ln_beta, *, tm=None):
    """
    hidden_states: (B, S, K)   -- concat of FFN intermediate + domain-enhance features
    input_tensor : (B, S, N)   -- residual
    w_cat        : (K, N)      -- concatenated dense + enhancement weights (already transposed)
    b_cat        : (N,)        -- summed bias
    ln_gamma/ln_beta: (N,)
    returns      : (B, S, N)
    """
    B, S, K = hidden_states.shape
    N = input_tensor.shape[-1]
    M = B * S

    # TODO(synk): if N is not a multiple of 128, pad the feature dim (and mask the LN stats)
    # to avoid masked partial stores; BERT hidden sizes (128/768/1024) are already lane-aligned.
    # TODO(synk): for very large K (many enhance branches), add a K grid axis ("arbitrary") with
    # an f32 accumulator scratch instead of keeping the full (K, N) weight resident.

    x2 = hidden_states.reshape(M, K)
    r2 = input_tensor.reshape(M, N)
    w_b = w_cat.astype(jnp.bfloat16)        # bf16 weight: half the HBM/VMEM, MXU-native
    b2 = b_cat.reshape(1, N)
    g2 = ln_gamma.reshape(1, N)
    be2 = ln_beta.reshape(1, N)

    x_item = jnp.dtype(hidden_states.dtype).itemsize
    res_item = jnp.dtype(input_tensor.dtype).itemsize
    out_item = x_item
    w_item = 2  # bf16

    # Sublane packing: f32 rows multiple of 8, bf16/fp16 of 16, int8/fp8 of 32.
    row_align = 8 if x_item >= 4 else (16 if x_item == 2 else 32)

    # Generation-aware VMEM capacity (64 MiB on v7x, 128 MiB on v5e/v6e).
    try:
        vmem_cap = int(pltpu.get_tpu_info().vmem_capacity_bytes)
    except Exception:
        vmem_cap = 64 << 20  # conservative fallback (v7x size)
    vmem_budget = max(vmem_cap - (12 << 20), 16 << 20)

    if tm is None:
        tm = 1024 if (x_item <= 2 or vmem_cap >= (96 << 20)) else 512

    # Clamp to problem size; split rows into >=2 tiles so both v7x TensorCores get work.
    tm = min(tm, _round_up(M, row_align))
    if M > row_align and pl.cdiv(M, tm) < 2:
        tm = _round_up(pl.cdiv(M, 2), row_align)
    tm = max(row_align, _round_up(tm, row_align))

    def working_set(t):
        return (
            K * N * w_item                  # resident weight (single-buffered)
            + 3 * 8 * N * 4                 # bias / gamma / beta (padded to 8 sublanes)
            + 2 * t * K * x_item            # double-buffered x tile
            + t * K * 2                     # bf16 cast of the x tile
            + 2 * t * N * res_item          # double-buffered residual tile
            + 2 * t * N * out_item          # double-buffered output tile
            + 2 * t * N * 4                 # f32 h + epilogue temporaries
        )

    while tm > row_align and working_set(tm) > vmem_budget:
        tm = max(row_align, _round_up(tm // 2, row_align))

    vmem_limit = int(min(max(working_set(tm) * 5 // 4 + (2 << 20), 32 << 20),
                         vmem_cap - (8 << 20)))

    grid = (pl.cdiv(M, tm),)

    cost = pl.CostEstimate(
        flops=2 * M * K * N,
        transcendentals=0,
        bytes_accessed=M * K * x_item + M * N * (res_item + out_item) + K * N * w_item,
    )

    kernel = functools.partial(bert_output_kernel, n_features=N)
    out_shape = jax.ShapeDtypeStruct((M, N), hidden_states.dtype)

    def make_call(single_buffer_residents):
        def resident(shape):
            if single_buffer_residents:
                return pl.BlockSpec(shape, lambda i: (0,) * len(shape),
                                    pipeline_mode=pl.Buffered(1))
            return pl.BlockSpec(shape, lambda i: (0,) * len(shape))

        return pl.pallas_call(
            kernel,
            out_shape=out_shape,
            grid_spec=pltpu.PrefetchScalarGridSpec(
                num_scalar_prefetch=0,
                grid=grid,
                in_specs=[
                    pl.BlockSpec((tm, K), lambda i: (i, 0)),   # x: row-tiled
                    resident((K, N)),                          # weight: VMEM-resident
                    resident((1, N)),                          # bias: resident
                    pl.BlockSpec((tm, N), lambda i: (i, 0)),   # residual: row-tiled
                    resident((1, N)),                          # gamma: resident
                    resident((1, N)),                          # beta: resident
                ],
                out_specs=pl.BlockSpec((tm, N), lambda i: (i, 0)),
            ),
            compiler_params=pltpu.CompilerParams(
                dimension_semantics=("parallel",),   # LN is per-row -> row tiles independent
                vmem_limit_bytes=vmem_limit,
            ),
            cost_estimate=cost,
        )

    try:
        out = make_call(True)(x2, w_b, b2, r2, g2, be2)
    except Exception:
        # Fallback: if this Pallas version rejects pl.Buffered(1), default double-buffering is
        # still correct (just keeps an extra weight copy in VMEM).
        out = make_call(False)(x2, w_b, b2, r2, g2, be2)

    return out.reshape(B, S, N)


def _reference_f32(hidden_states, input_tensor, w_cat, b_cat, ln_gamma, ln_beta):
    h = hidden_states.astype(jnp.float32) @ w_cat.astype(jnp.float32) + b_cat + input_tensor
    mean = jnp.mean(h, axis=-1, keepdims=True)
    var = jnp.mean((h - mean) ** 2, axis=-1, keepdims=True)
    return (h - mean) * lax.rsqrt(var + LN_EPS) * ln_gamma + ln_beta


def _reference_bf16(hidden_states, input_tensor, w_cat, b_cat, ln_gamma, ln_beta):
    # Matches the kernel's compute dtypes: bf16 MXU inputs, f32 accumulation / epilogue.
    h = jnp.dot(hidden_states.astype(jnp.bfloat16), w_cat.astype(jnp.bfloat16),
                preferred_element_type=jnp.float32)
    h = h + b_cat.astype(jnp.float32) + input_tensor.astype(jnp.float32)
    mean = jnp.mean(h, axis=-1, keepdims=True)
    var = jnp.mean((h - mean) ** 2, axis=-1, keepdims=True)
    return (h - mean) * lax.rsqrt(var + LN_EPS) * ln_gamma + ln_beta


if __name__ == "__main__":
    # Config: hidden_size=128, intermediate_size=256, domain_ffn_enhance={"bio": 128}
    hidden_size = 128
    intermediate_size = 256
    enhance_sizes = {"bio": 128}
    K_total = intermediate_size + sum(enhance_sizes.values())
    dtype = jnp.float32

    key = jax.random.PRNGKey(0)
    keys = jax.random.split(key, 8)

    # Deterministic "parameters" (synthetic init, matching nn.Linear / nn.LayerNorm shapes)
    w_dense = jax.random.normal(keys[0], (hidden_size, intermediate_size), dtype) * 0.02
    b_dense = jax.random.normal(keys[1], (hidden_size,), dtype) * 0.02
    w_bio = jax.random.normal(keys[2], (hidden_size, enhance_sizes["bio"]), dtype) * 0.02
    b_bio = jax.random.normal(keys[3], (hidden_size,), dtype) * 0.02
    ln_gamma = jnp.ones((hidden_size,), dtype)
    ln_beta = jnp.zeros((hidden_size,), dtype)

    # concat_linear: concatenate weights along in_features, sum biases; transpose so x @ W works.
    w_cat_t = jnp.concatenate([w_dense, w_bio], axis=1).T   # (K_total, hidden)
    b_cat = b_dense + b_bio                                  # (hidden,)

    # --- test 1: small, rows divide tile exactly ---
    batch, seq = 2, 8
    hidden_states = jax.random.normal(keys[4], (batch, seq, K_total), dtype)
    input_tensor = jax.random.normal(keys[5], (batch, seq, hidden_size), dtype)

    out = jax.block_until_ready(
        bert_output(hidden_states, input_tensor, w_cat_t, b_cat, ln_gamma, ln_beta))
    ref_b = _reference_bf16(hidden_states, input_tensor, w_cat_t, b_cat, ln_gamma, ln_beta)
    ref_f = _reference_f32(hidden_states, input_tensor, w_cat_t, b_cat, ln_gamma, ln_beta)
    assert out.shape == ref_f.shape
    assert jnp.allclose(out, ref_b, atol=2e-3, rtol=2e-3), "mismatch vs bf16 reference (test 1)"
    assert jnp.allclose(out, ref_f, atol=3e-2, rtol=3e-2), "mismatch vs f32 reference (test 1)"

    # --- test 2: ragged row count exercises the partial-last-block path (no wrapper pad) ---
    batch2, seq2 = 3, 5
    hs2 = jax.random.normal(keys[6], (batch2, seq2, K_total), dtype)
    it2 = jax.random.normal(keys[7], (batch2, seq2, hidden_size), dtype)

    out2 = jax.block_until_ready(
        bert_output(hs2, it2, w_cat_t, b_cat, ln_gamma, ln_beta))
    ref2_b = _reference_bf16(hs2, it2, w_cat_t, b_cat, ln_gamma, ln_beta)
    ref2_f = _reference_f32(hs2, it2, w_cat_t, b_cat, ln_gamma, ln_beta)
    assert out2.shape == ref2_f.shape
    assert jnp.allclose(out2, ref2_b, atol=2e-3, rtol=2e-3), "mismatch vs bf16 reference (test 2)"
    assert jnp.allclose(out2, ref2_f, atol=3e-2, rtol=3e-2), "mismatch vs f32 reference (test 2)"

    print("KERNEL_OK")
</pallas_src>

<mosaic_0001>
module attributes {stable_mosaic.version = 11 : i64} {
  func.func @bert_output_kernel(%arg0: i32, %arg1: memref<8x384xf32, #tpu.memory_space<vmem>>, %arg2: memref<384x128xbf16, #tpu.memory_space<vmem>>, %arg3: memref<1x128xf32, #tpu.memory_space<vmem>>, %arg4: memref<8x128xf32, #tpu.memory_space<vmem>>, %arg5: memref<1x128xf32, #tpu.memory_space<vmem>>, %arg6: memref<1x128xf32, #tpu.memory_space<vmem>>, %arg7: memref<8x128xf32, #tpu.memory_space<vmem>>) attributes {dimension_semantics = [#tpu.dimension_semantics<parallel>], iteration_bounds = array<i64: 2>, scalar_prefetch = 0 : i64, scratch_operands = 0 : i64, tpu.core_type = #tpu.core_type<tc>, window_params = [{transform_indices = @transform_0, window_bounds = array<i64: 8, 384>}, {pipeline_mode = #tpu.pipeline_mode<synchronous>, transform_indices = @transform_1, window_bounds = array<i64: 384, 128>}, {pipeline_mode = #tpu.pipeline_mode<synchronous>, transform_indices = @transform_2, window_bounds = array<i64: 1, 128>}, {transform_indices = @transform_3, window_bounds = array<i64: 8, 128>}, {pipeline_mode = #tpu.pipeline_mode<synchronous>, transform_indices = @transform_4, window_bounds = array<i64: 1, 128>}, {pipeline_mode = #tpu.pipeline_mode<synchronous>, transform_indices = @transform_5, window_bounds = array<i64: 1, 128>}, {transform_indices = @transform_6, window_bounds = array<i64: 8, 128>}]} {
    %c0 = arith.constant 0 : index
    %c0_0 = arith.constant 0 : index
    %0 = vector.load %arg1[%c0, %c0_0] : memref<8x384xf32, #tpu.memory_space<vmem>>, vector<8x384xf32>
    %1 = arith.truncf %0 : vector<8x384xf32> to vector<8x384xbf16>
    %c0_1 = arith.constant 0 : index
    %c0_2 = arith.constant 0 : index
    %2 = vector.load %arg2[%c0_1, %c0_2] : memref<384x128xbf16, #tpu.memory_space<vmem>>, vector<384x128xbf16>
    %cst = arith.constant dense<0.000000e+00> : vector<8x128xf32>
    %3 = tpu.matmul %1, %2, %cst {dimension_numbers = #tpu.dot_dimension_numbers<[1], [0], [0], [1], [0, 0, 1, 1], [], []>} : vector<8x384xbf16>, vector<384x128xbf16>, vector<8x128xf32> -> vector<8x128xf32>
    %c0_3 = arith.constant 0 : index
    %c0_4 = arith.constant 0 : index
    %4 = vector.load %arg3[%c0_3, %c0_4] : memref<1x128xf32, #tpu.memory_space<vmem>>, vector<1x128xf32>
    %5 = vector.broadcast %4 : vector<1x128xf32> to vector<8x128xf32>
    %6 = arith.addf %3, %5 : vector<8x128xf32>
    %c0_5 = arith.constant 0 : index
    %c0_6 = arith.constant 0 : index
    %7 = vector.load %arg4[%c0_5, %c0_6] : memref<8x128xf32, #tpu.memory_space<vmem>>, vector<8x128xf32>
    %8 = arith.addf %6, %7 : vector<8x128xf32>
    %cst_7 = arith.constant dense<0.000000e+00> : vector<8xf32>
    %9 = vector.multi_reduction <add>, %8, %cst_7 [1] : vector<8x128xf32> to vector<8xf32>
    %10 = vector.shape_cast %9 : vector<8xf32> to vector<8x1xf32>
    %11 = arith.mulf %8, %8 : vector<8x128xf32>
    %cst_8 = arith.constant dense<0.000000e+00> : vector<8xf32>
    %12 = vector.multi_reduction <add>, %11, %cst_8 [1] : vector<8x128xf32> to vector<8xf32>
    %13 = vector.shape_cast %12 : vector<8xf32> to vector<8x1xf32>
    %cst_9 = arith.constant 7.812500e-03 : f32
    %14 = vector.broadcast %cst_9 : f32 to vector<8x1xf32>
    %15 = arith.mulf %10, %14 : vector<8x1xf32>
    %cst_10 = arith.constant 7.812500e-03 : f32
    %16 = vector.broadcast %cst_10 : f32 to vector<8x1xf32>
    %17 = arith.mulf %13, %16 : vector<8x1xf32>
    %18 = arith.mulf %15, %15 : vector<8x1xf32>
    %19 = arith.subf %17, %18 : vector<8x1xf32>
    %cst_11 = arith.constant 0.000000e+00 : f32
    %20 = vector.broadcast %cst_11 : f32 to vector<8x1xf32>
    %21 = arith.maximumf %19, %20 : vector<8x1xf32>
    %cst_12 = arith.constant 9.99999996E-13 : f32
    %22 = vector.broadcast %cst_12 : f32 to vector<8x1xf32>
    %23 = arith.addf %21, %22 : vector<8x1xf32>
    %24 = math.rsqrt %23 : vector<8x1xf32>
    %25 = vector.broadcast %15 : vector<8x1xf32> to vector<8x128xf32>
    %26 = arith.subf %8, %25 : vector<8x128xf32>
    %27 = vector.broadcast %24 : vector<8x1xf32> to vector<8x128xf32>
    %28 = arith.mulf %26, %27 : vector<8x128xf32>
    %c0_13 = arith.constant 0 : index
    %c0_14 = arith.constant 0 : index
    %29 = vector.load %arg5[%c0_13, %c0_14] : memref<1x128xf32, #tpu.memory_space<vmem>>, vector<1x128xf32>
    %30 = vector.broadcast %29 : vector<1x128xf32> to vector<8x128xf32>
    %31 = arith.mulf %28, %30 : vector<8x128xf32>
    %c0_15 = arith.constant 0 : index
    %c0_16 = arith.constant 0 : index
    %32 = vector.load %arg6[%c0_15, %c0_16] : memref<1x128xf32, #tpu.memory_space<vmem>>, vector<1x128xf32>
    %33 = vector.broadcast %32 : vector<1x128xf32> to vector<8x128xf32>
    %34 = arith.addf %31, %33 : vector<8x128xf32>
    %c0_17 = arith.constant 0 : index
    %c0_18 = arith.constant 0 : index
    %35 = vector.load %arg7[%c0_17, %c0_18] : memref<8x128xf32, #tpu.memory_space<vmem>>, vector<8x128xf32>
    tpu.vector_store %arg7[%c0_17, %c0_18], %34 {strides = array<i32>} : memref<8x128xf32, #tpu.memory_space<vmem>>, vector<8x128xf32>,
    return
  }
  func.func @transform_0(%arg0: i32) -> (i32, i32) {
    %c0_i32 = arith.constant 0 : i32
    %c0_i32_0 = arith.constant 0 : i32
    return %arg0, %c0_i32 : i32, i32
  }
  func.func @transform_1(%arg0: i32) -> (i32, i32) {
    %c0_i32 = arith.constant 0 : i32
    %c0_i32_0 = arith.constant 0 : i32
    %c0_i32_1 = arith.constant 0 : i32
    return %c0_i32, %c0_i32_0 : i32, i32
  }
  func.func @transform_2(%arg0: i32) -> (i32, i32) {
    %c0_i32 = arith.constant 0 : i32
    %c0_i32_0 = arith.constant 0 : i32
    %c0_i32_1 = arith.constant 0 : i32
    return %c0_i32, %c0_i32_0 : i32, i32
  }
  func.func @transform_3(%arg0: i32) -> (i32, i32) {
    %c0_i32 = arith.constant 0 : i32
    %c0_i32_0 = arith.constant 0 : i32
    return %arg0, %c0_i32 : i32, i32
  }
  func.func @transform_4(%arg0: i32) -> (i32, i32) {
    %c0_i32 = arith.constant 0 : i32
    %c0_i32_0 = arith.constant 0 : i32
    %c0_i32_1 = arith.constant 0 : i32
    return %c0_i32, %c0_i32_0 : i32, i32
  }
  func.func @transform_5(%arg0: i32) -> (i32, i32) {
    %c0_i32 = arith.constant 0 : i32
    %c0_i32_0 = arith.constant 0 : i32
    %c0_i32_1 = arith.constant 0 : i32
    return %c0_i32, %c0_i32_0 : i32, i32
  }
  func.func @transform_6(%arg0: i32) -> (i32, i32) {
    %c0_i32 = arith.constant 0 : i32
    %c0_i32_0 = arith.constant 0 : i32
    return %arg0, %c0_i32 : i32, i32
  }
}

module attributes {stable_mosaic.version = 11 : i64} {
  func.func @bert_output_kernel(%arg0: i32, %arg1: memref<8x384xf32, #tpu.memory_space<vmem>>, %arg2: memref<384x128xbf16, #tpu.memory_space<vmem>>, %arg3: memref<1x128xf32, #tpu.memory_space<vmem>>, %arg4: memref<8x128xf32, #tpu.memory_space<vmem>>, %arg5: memref<1x128xf32, #tpu.memory_space<vmem>>, %arg6: memref<1x128xf32, #tpu.memory_space<vmem>>, %arg7: memref<8x128xf32, #tpu.memory_space<vmem>>) attributes {dimension_semantics = [#tpu.dimension_semantics<parallel>], iteration_bounds = array<i64: 2>, scalar_prefetch = 0 : i64, scratch_operands = 0 : i64, tpu.core_type = #tpu.core_type<tc>, window_params = [{transform_indices = @transform_0, window_bounds = array<i64: 8, 384>}, {pipeline_mode = #tpu.pipeline_mode<synchronous>, transform_indices = @transform_1, window_bounds = array<i64: 384, 128>}, {pipeline_mode = #tpu.pipeline_mode<synchronous>, transform_indices = @transform_2, window_bounds = array<i64: 1, 128>}, {transform_indices = @transform_3, window_bounds = array<i64: 8, 128>}, {pipeline_mode = #tpu.pipeline_mode<synchronous>, transform_indices = @transform_4, window_bounds = array<i64: 1, 128>}, {pipeline_mode = #tpu.pipeline_mode<synchronous>, transform_indices = @transform_5, window_bounds = array<i64: 1, 128>}, {transform_indices = @transform_6, window_bounds = array<i64: 8, 128>}]} {
    %c0 = arith.constant 0 : index
    %c0_0 = arith.constant 0 : index
    %0 = vector.load %arg1[%c0, %c0_0] : memref<8x384xf32, #tpu.memory_space<vmem>>, vector<8x384xf32>
    %1 = arith.truncf %0 : vector<8x384xf32> to vector<8x384xbf16>
    %c0_1 = arith.constant 0 : index
    %c0_2 = arith.constant 0 : index
    %2 = vector.load %arg2[%c0_1, %c0_2] : memref<384x128xbf16, #tpu.memory_space<vmem>>, vector<384x128xbf16>
    %cst = arith.constant dense<0.000000e+00> : vector<8x128xf32>
    %3 = tpu.matmul %1, %2, %cst {dimension_numbers = #tpu.dot_dimension_numbers<[1], [0], [0], [1], [0, 0, 1, 1], [], []>} : vector<8x384xbf16>, vector<384x128xbf16>, vector<8x128xf32> -> vector<8x128xf32>
    %c0_3 = arith.constant 0 : index
    %c0_4 = arith.constant 0 : index
    %4 = vector.load %arg3[%c0_3, %c0_4] : memref<1x128xf32, #tpu.memory_space<vmem>>, vector<1x128xf32>
    %5 = vector.broadcast %4 : vector<1x128xf32> to vector<8x128xf32>
    %6 = arith.addf %3, %5 : vector<8x128xf32>
    %c0_5 = arith.constant 0 : index
    %c0_6 = arith.constant 0 : index
    %7 = vector.load %arg4[%c0_5, %c0_6] : memref<8x128xf32, #tpu.memory_space<vmem>>, vector<8x128xf32>
    %8 = arith.addf %6, %7 : vector<8x128xf32>
    %cst_7 = arith.constant dense<0.000000e+00> : vector<8xf32>
    %9 = vector.multi_reduction <add>, %8, %cst_7 [1] : vector<8x128xf32> to vector<8xf32>
    %10 = vector.shape_cast %9 : vector<8xf32> to vector<8x1xf32>
    %11 = arith.mulf %8, %8 : vector<8x128xf32>
    %cst_8 = arith.constant dense<0.000000e+00> : vector<8xf32>
    %12 = vector.multi_reduction <add>, %11, %cst_8 [1] : vector<8x128xf32> to vector<8xf32>
    %13 = vector.shape_cast %12 : vector<8xf32> to vector<8x1xf32>
    %cst_9 = arith.constant 7.812500e-03 : f32
    %14 = vector.broadcast %cst_9 : f32 to vector<8x1xf32>
    %15 = arith.mulf %10, %14 : vector<8x1xf32>
    %cst_10 = arith.constant 7.812500e-03 : f32
    %16 = vector.broadcast %cst_10 : f32 to vector<8x1xf32>
    %17 = arith.mulf %13, %16 : vector<8x1xf32>
    %18 = arith.mulf %15, %15 : vector<8x1xf32>
    %19 = arith.subf %17, %18 : vector<8x1xf32>
    %cst_11 = arith.constant 0.000000e+00 : f32
    %20 = vector.broadcast %cst_11 : f32 to vector<8x1xf32>
    %21 = arith.maximumf %19, %20 : vector<8x1xf32>
    %cst_12 = arith.constant 9.99999996E-13 : f32
    %22 = vector.broadcast %cst_12 : f32 to vector<8x1xf32>
    %23 = arith.addf %21, %22 : vector<8x1xf32>
    %24 = math.rsqrt %23 : vector<8x1xf32>
    %25 = vector.broadcast %15 : vector<8x1xf32> to vector<8x128xf32>
    %26 = arith.subf %8, %25 : vector<8x128xf32>
    %27 = vector.broadcast %24 : vector<8x1xf32> to vector<8x128xf32>
    %28 = arith.mulf %26, %27 : vector<8x128xf32>
    %c0_13 = arith.constant 0 : index
    %c0_14 = arith.constant 0 : index
    %29 = vector.load %arg5[%c0_13, %c0_14] : memref<1x128xf32, #tpu.memory_space<vmem>>, vector<1x128xf32>
    %30 = vector.broadcast %29 : vector<1x128xf32> to vector<8x128xf32>
    %31 = arith.mulf %28, %30 : vector<8x128xf32>
    %c0_15 = arith.constant 0 : index
    %c0_16 = arith.constant 0 : index
    %32 = vector.load %arg6[%c0_15, %c0_16] : memref<1x128xf32, #tpu.memory_space<vmem>>, vector<1x128xf32>
    %33 = vector.broadcast %32 : vector<1x128xf32> to vector<8x128xf32>
    %34 = arith.addf %31, %33 : vector<8x128xf32>
    %c0_17 = arith.constant 0 : index
    %c0_18 = arith.constant 0 : index
    %35 = vector.load %arg7[%c0_17, %c0_18] : memref<8x128xf32, #tpu.memory_space<vmem>>, vector<8x128xf32>
    tpu.vector_store %arg7[%c0_17, %c0_18], %34 {strides = array<i32>} : memref<8x128xf32, #tpu.memory_space<vmem>>, vector<8x128xf32>,
    return
  }
  func.func @transform_0(%arg0: i32) -> (i32, i32) {
    %c0_i32 = arith.constant 0 : i32
    %c0_i32_0 = arith.constant 0 : i32
    return %arg0, %c0_i32 : i32, i32
  }
  func.func @transform_1(%arg0: i32) -> (i32, i32) {
    %c0_i32 = arith.constant 0 : i32
    %c0_i32_0 = arith.constant 0 : i32
    %c0_i32_1 = arith.constant 0 : i32
    return %c0_i32, %c0_i32_0 : i32, i32
  }
  func.func @transform_2(%arg0: i32) -> (i32, i32) {
    %c0_i32 = arith.constant 0 : i32
    %c0_i32_0 = arith.constant 0 : i32
    %c0_i32_1 = arith.constant 0 : i32
    return %c0_i32, %c0_i32_0 : i32, i32
  }
  func.func @transform_3(%arg0: i32) -> (i32, i32) {
    %c0_i32 = arith.constant 0 : i32
    %c0_i32_0 = arith.constant 0 : i32
    return %arg0, %c0_i32 : i32, i32
  }
  func.func @transform_4(%arg0: i32) -> (i32, i32) {
    %c0_i32 = arith.constant 0 : i32
    %c0_i32_0 = arith.constant 0 : i32
    %c0_i32_1 = arith.constant 0 : i32
    return %c0_i32, %c0_i32_0 : i32, i32
  }
  func.func @transform_5(%arg0: i32) -> (i32, i32) {
    %c0_i32 = arith.constant 0 : i32
    %c0_i32_0 = arith.constant 0 : i32
    %c0_i32_1 = arith.constant 0 : i32
    return %c0_i32, %c0_i32_0 : i32, i32
  }
  func.func @transform_6(%arg0: i32) -> (i32, i32) {
    %c0_i32 = arith.constant 0 : i32
    %c0_i32_0 = arith.constant 0 : i32
    return %arg0, %c0_i32 : i32, i32
  }
}

</mosaic_0001>

<bundles_post_ra>
// kernel: tpu_custom_call.1
= control target key start
LH: loop header
LB: loop body
LE: loop exit
PB: predicated region body
PF: predicated region fallthrough
CT: control target
= control target key end

     0   :  { %s1366_s0 = inlined_call_operand.hbm [shape: f32[16,384], index: 0, kind: input, shape index: {}]   ;;  %s1367_s1 = inlined_call_operand.hbm [shape: bf16[384,128], index: 1, kind: input, shape index: {}]   ;;  %s1368_s2 = inlined_call_operand.vmem [shape: f32[1,128], index: 2, kind: input, shape index: {}]   ;;  %s1369_s3 = inlined_call_operand.hbm [shape: f32[16,128], index: 3, kind: input, shape index: {}]   ;;  %s1370_s4 = inlined_call_operand.vmem [shape: f32[1,128], index: 4, kind: input, shape index: {}]   ;;  %s1371_s5 = inlined_call_operand.vmem [shape: f32[1,128], index: 5, kind: input, shape index: {}]   ;;  %s1372_s6 = inlined_call_operand.hbm [shape: f32[16,128], index: 6, kind: output, shape index: {}]  }
   0x1   :  { %1379 = sst [smem:[#allocation15_spill]] %s1366_s0 }
   0x2   :  { %11 = vsyncpa [#allocation3], 0 }
   0x3   :  { %13 = vsyncpa [#allocation3 + $0x1], 0 }
   0x4   :  { %14 = vsyncpa [#allocation6], 0 }
   0x5   :  { %15 = vsyncpa [#allocation4], 0 }
   0x6   :  { %17 = vsyncpa [#allocation4 + $0x1], 0  ;;  %s1137_s21 = smov 0   ;;  %s1139_s22 = smov 0  }
   0x7   :  { %s1141_s23 = smov 0   ;;  %s1143_s24 = smov 0  }
   0x8 LB: > { %1380 = sst [smem:[#allocation13_spill]] %s1088_s23  ;;  %s1158_s25 = sadd.s32 1, %s1092_s24   ;;  %s1092_s24 = sphi %s1143_s24, %s1402_s24   ;;  %s1088_s23 = sphi %s1141_s23, %s1399_s23   ;;  %s1084_s22 = sphi %s1139_s22, %s1401_s22   ;;  %s1080_s21 = sphi %s1137_s21, %s1400_s21  }
   0x9   : > { %s30_s26 = sadd.s32 1, %s1088_s23  ;;  %s27_s27 = ssub.s32 %s1092_s24, %s1158_s25 }
   0xa   : > { %p1373_p0 = scmp.ne.s32.totalorder %s1088_s23, %s1084_s22  ;;  %p28_p1 = scmp.eq.s32.totalorder %s27_s27, 0 }
   0xb   : > { %p38_p2 = scmp.eq.s32.totalorder %s1092_s24, 0  ;;  %p872_p4 = scmp.lt.s32.totalorder %s1092_s24, 2 }
   0xc   : > { %s1169_s28 = scalar_select %p28_p1, %s1088_s23, %s30_s26  }
   0xd   : > { %p39_p5 = por %p38_p2, %p1373_p0  ;;  %s225_s29 = sand.u32 1, %s1092_s24  }
   0xe   : > { %1381 = sst [smem:[#allocation14_spill]] %s1169_s28  ;;  %s227_s30 = sand.u32 1, %s1088_s23  }
   0xf   : > { %s843_s7 = smul.u32 24, %s227_s30  ;;  %p1178_p6 = pnand %p872_p4, %p39_p5 }
  0x10   : > { %s844_s9 = smul.u32 384, %s1092_s24  ;;  %s1383_s0 = sld [smem:[#allocation15_spill]] }
  0x11   : > { %s229_s13 = scalar_lea.vmem [#allocation2], %s843_s7  ;;  %s1188_s15 = scalar_lea.sflag [#allocation3], %s225_s29 }
  0x12   : > { %s237_s14 = sshll.u32 %s229_s13, 4  ;;  %p1375_p8 = pneg %p1178_p6  ;;  %s238_s14 = int_to_ptr.vmem [resolvable:$true] %s237_s14 }
  0x16   : > { %s1186_s12 = scalar_lea.hbm %s1383_s0, %s844_s9  ;;  %s943_s19 = scalar_lea.hbm %s1383_s0, 768 }
  0x17   : > { %s938_s16 = scalar_lea.hbm %s1186_s12, 384  ;;  %p944_p11 = scmp.lt.s32.totalorder %s1186_s12, %s1383_s0 }
  0x18   : > { %p939_p7 = scmp.ne.s32.totalorder %s1186_s12, %s938_s16  ;;  %p945_p12 = scmp.lt.s32.totalorder %s943_s19, %s938_s16 }
  0x1a   : > { %p941_p9 = pnand %p1375_p8, %p939_p7  ;;  %p946_p13 = por %p945_p12, %p944_p11 }
  0x1c   : > { %p942_p10 = pneg %p941_p9 }
  0x1e   : > { %p947_p1 = pnand %p946_p13, %p942_p10 }
  0x20   : > { %950 = shalt.err (!%p947_p1)
}
  0x21   : > { %s951_s27 = scalar_lea.vmem %s238_s14, 384  ;;  %s1094_s29 = smov [#allocation2]  }
  0x22   : > { %p952_p2 = scmp.ne.s32.totalorder %s238_s14, %s951_s27  ;;  %s956_s7 = sshll.u32 %s1094_s29, 4  ;;  %s957_s7 = int_to_ptr.vmem [resolvable:$false] %s956_s7 }
  0x23   : > { %s958_s9 = scalar_lea.vmem %s957_s7, 768  ;;  %p959_p7 = scmp.lt.s32.totalorder %s238_s14, %s957_s7 }
  0x24   : > { %p954_p4 = pnand %p952_p2, %p1375_p8  ;;  %p960_p9 = scmp.lt.s32.totalorder %s958_s9, %s951_s27 }
  0x26   : > { %p955_p5 = pneg %p954_p4  ;;  %p961_p3 = por %p960_p9, %p959_p7 }
  0x28   : > { %p962_p0 = pnand %p961_p3, %p955_p5 }
  0x2a   : > { %965 = shalt.err (!%p962_p0)
}
  0x2b   : > { %863 = dma.hbm_to_vmem [thread:$0]  (!%p1178_p6), %s1186_s12, 384, %s238_s14, %s1188_s15  }
  0x2c   : > { %s1212_s10 = sadd.s32 4294967295, %s1092_s24   ;;  %s750_s11 = sadd.s32 4294967294, %s1092_s24  }
  0x2d   : > { %p43_p0 = scmp.ne.s32.totalorder %s1084_s22, %s1080_s21  ;;  %p1374_p3 = scmp.eq.s32.totalorder %s1212_s10, 0 }
  0x2e   : > { %p177_p10 = scmp.eq.s32.totalorder %s1212_s10, 1  ;;  %p183_p11 = scmp.eq.s32.totalorder %s750_s11, 1 }
  0x2f   : > { %p1221_p12 = por %p1374_p3, %p43_p0  ;;  %p751_p13 = scmp.ge.s32.totalorder %s1092_s24, 1 }
  0x30   : > { %p1385_p1 = scmp.ne.s32.totalorder %s1088_s23, %s1084_s22  ;;  %p1233_p4 = por %p183_p11, %p43_p0 }
  0x31   : > { %s1384_s13 = scalar_select %p1221_p12, 1, 0 }
  0x32   : > { %p1229_p2 = por %p177_p10, %p1385_p1  ;;  %p190_p5 = scmp.lt.s32.totalorder %s1092_s24, 3 }
  0x33   : > { %s1387_s14 = scalar_select %p1233_p4, 1, 0 }
  0x34   : > { %s1386_s12 = scalar_select %p1229_p2, 1, 0 }
  0x35   : > { %p1238_p7 = pnand %p751_p13, %p190_p5  ;;  %s1095_s17 = smov [#allocation5]  }
  0x36   : > { %s202_s18 = sshll.u32 %s1095_s17, 4  ;;  %s755_s19 = sshll.u32 %s227_s30, 3  ;;  %s203_s18 = int_to_ptr.vmem [resolvable:$true] %s202_s18 }
  0x37   : > { %p856_p9 = pneg %p1238_p7  ;;  %s756_s20 = sshll.u32 %s1092_s24, 7 }
  0x38   : > { %s1256_s7 = scalar_lea.hbm %s1369_s3, %s756_s20  ;;  %s248_s9 = scalar_lea.vmem [#allocation7], %s755_s19 }
  0x39   : > { %p1249_p10 = pnand %p856_p9, %p1374_p3  ;;  %s255_s11 = sshll.u32 %s248_s9, 4  ;;  %s1258_s11 = int_to_ptr.vmem [resolvable:$true] %s255_s11 }
  0x3a   : > { %s977_s17 = scalar_lea.vmem %s203_s18, 3072  ;;  %p985_p5 = scmp.lt.s32.totalorder %s203_s18, %s203_s18 }
  0x3b   : > { %p968_p0 = pneg %p1249_p10  ;;  %p978_p11 = scmp.ne.s32.totalorder %s203_s18, %s977_s17 }
  0x3c   : > { %p986_p9 = scmp.lt.s32.totalorder %s977_s17, %s977_s17 }
  0x3d   : > { %p980_p13 = pnand %p978_p11, %p968_p0 }
  0x3e   : > { %p987_p3 = por %p986_p9, %p985_p5 }
  0x3f   : > { %p981_p1 = pneg %p980_p13 }
  0x41   : > { %p988_p8 = pnand %p987_p3, %p981_p1 }
  0x43   : > { %991 = shalt.err (!%p988_p8)
}
  0x44   : > { %s1096_s30 = smov 64   ;;  %s1097_s19 = smov 4  }
  0x45   : > { %859 = dma.hbm_to_vmem [thread:$0]  (!%p1249_p10), %s1367_s1, 3072, %s203_s18, [#allocation6], %s1096_s30, %s1096_s30, %s1097_s19  }
  0x46   : > { %s992_s29 = scalar_lea.hbm %s1256_s7, 128  ;;  %p1390_p11 = pneg %p1178_p6 }
  0x47   : > { %p993_p0 = scmp.ne.s32.totalorder %s1256_s7, %s992_s29  ;;  %s997_s0 = scalar_lea.hbm %s1369_s3, 256 }
  0x48   : > { %p998_p8 = scmp.lt.s32.totalorder %s1256_s7, %s1369_s3  ;;  %p999_p3 = scmp.lt.s32.totalorder %s997_s0, %s992_s29 }
  0x49   : > { %p995_p13 = pnand %p993_p0, %p1390_p11 }
  0x4a   : > { %p1000_p1 = por %p999_p3, %p998_p8 }
  0x4b   : > { %p996_p5 = pneg %p995_p13 }
  0x4d   : > { %p1001_p9 = pnand %p1000_p1, %p996_p5 }
  0x4f   : > { %1004 = shalt.err (!%p1001_p9)
}
  0x50   : > { %s1005_s18 = scalar_lea.vmem %s1258_s11, 128  ;;  %p1391_p0 = pmov %p1390_p11 }
  0x51   : > { %p1006_p10 = scmp.ne.s32.totalorder %s1258_s11, %s1005_s18  ;;  %s1098_s26 = smov [#allocation7]  }
  0x52   : > { %s1010_s30 = sshll.u32 %s1098_s26, 4  ;;  %s1011_s30 = int_to_ptr.vmem [resolvable:$false] %s1010_s30 }
  0x53   : > { %p1008_p11 = pnand %p1006_p10, %p1391_p0  ;;  %s1012_s19 = scalar_lea.vmem %s1011_s30, 256 }
  0x54   : > { %p1013_p4 = scmp.lt.s32.totalorder %s1258_s11, %s1011_s30  ;;  %p1014_p2 = scmp.lt.s32.totalorder %s1012_s19, %s1005_s18 }
  0x55   : > { %p1009_p13 = pneg %p1008_p11 }
  0x56   : > { %p1015_p12 = por %p1014_p2, %p1013_p4 }
  0x58   : > { %p1016_p8 = pnand %p1015_p12, %p1009_p13 }
  0x5a   : > { %1019 = shalt.err (!%p1016_p8)
}
  0x5b   : > { %866 = dma.hbm_to_vmem [thread:$0]  (!%p1178_p6), %s1256_s7, 128, %s1258_s11, %s1188_s15  }
  0x5c   : > { %264 = sbr.rel (%p1238_p7) target bundleno = 524 (0x20c), region = 44  ;;  %s266_s0 = sand.u32 (!%p1238_p7), 1, %s1212_s10  }
  0x5d   : > { %s1294_s23 = sand.u32 (!%p1238_p7), 1, %s1084_s22   ;;  %s267_s20 = scalar_lea.sflag (!%p1238_p7), [#allocation3], %s266_s0 }
  0x5e   : > { %s845_s28 = smul.u32 (!%p1238_p7), 24, %s1294_s23  ;;  %p1392_p12 = scmp.ne.s32.totalorder (!%p1238_p7), %s1384_s13, 0 }
  0x60   : > { %s1297_s27 = scalar_lea.vmem (!%p1238_p7), [#allocation2], %s845_s28 }
  0x61   : > { %1063 = dma.done.wait (%p1392_p12), %s267_s20, 384  }
  0x62   : > { %1065 = vsyncadd (%p1392_p12), %s267_s20, 4294966912  ;;  %p1393_p6 = scmp.eq.s32.totalorder %s1212_s10, 0 }
  0x64   : > { %1067 = dma.done.wait (%p1393_p6), [#allocation6], 3072   ;;  %p1394_p2 = pmov %p1393_p6 }
  0x65   : > { %s759_s8 = sshll.u32 %s1294_s23, 3 }
  0x66   : > { %1069 = vsyncadd (%p1394_p2), [#allocation6], 4294964224  ;;  %s1310_s15 = scalar_lea.vmem [#allocation7], %s759_s8 }
  0x67   : > { %1071 = dma.done.wait (%p1392_p12), %s267_s20, 128  }
  0x68   : > { %1073 = vsyncadd (%p1392_p12), %s267_s20, 4294967168  ;;  %v1099_v0 = vmov 0.0   ;;  %vm1100_vm0 = vmmov 0   ;;  %v912_v1 = vld [vmem:[#allocation5 + $0x78] sm:$0xff]   ;;  %v915_v4 = vld [vmem:[#allocation5 + $0x70] sm:$0xff]   ;;  %s789_s17 = sshll.u32 %s1212_s10, 7 }
  0x69   : > { %823 = vmatprep.subr.bf16.mxu1 %v1099_v0  ;;  %839 = vmatprep.mubr.msk.bf16.mxu1 %vm1100_vm0, %v1099_v0  ;;  %v913_v2 = vld [vmem:[#allocation5 + $0x38] sm:$0xff]   ;;  %v916_v5 = vld [vmem:[#allocation5 + $0x30] sm:$0xff]   ;;  %v918_v7 = vld [vmem:[#allocation5 + $0x68] sm:$0xff]   ;;  %s316_s18 = scalar_lea.vmem [#allocation8], %s759_s8  ;;  %s648_s0 = scalar_lea.hbm %s1372_s6, %s789_s17 }
  0x6a   : > { %792 = vmatprep.subr.bf16.mxu0 %v912_v1  ;;  %v914_v3 = vld [vmem:[#allocation5 + $0xb8] sm:$0xff]   ;;  %v917_v6 = vld [vmem:[#allocation5 + $0xb0] sm:$0xff]   ;;  %v919_v8 = vld [vmem:[#allocation5 + $0x28] sm:$0xff]   ;;  %s650_s26 = sshll.u32 %s316_s18, 4  ;;  %s637_s28 = scalar_lea.sflag [#allocation4], %s1294_s23  ;;  %s651_s26 = int_to_ptr.vmem [resolvable:$true] %s650_s26 }
  0x6b   : > { %793 = vmatpush3.bf16.msra.mxu0 %v913_v2  ;;  %824 = vmatpush3.bf16.msra.mxu1 %v914_v3  ;;  %v920_v9 = vld [vmem:[#allocation5 + $0xa8] sm:$0xff]   ;;  %v921_v10 = vld [vmem:[#allocation5 + $0x60] sm:$0xff]   ;;  %v924_v13 = vld [vmem:[#allocation5 + $0x58] sm:$0xff]   ;;  %s1020_s20 = scalar_lea.vmem %s651_s26, 128  ;;  %p1395_p7 = scmp.ne.s32.totalorder %s1386_s12, 0 }
  0x6c   : > { %794 = vmatprep.subr.bf16.mxu0 %v915_v4  ;;  %825 = vmatprep.subr.bf16.mxu1 %v1099_v0  ;;  %v922_v11 = vld [vmem:[#allocation5 + $0x20] sm:$0xff]   ;;  %v925_v14 = vld [vmem:[#allocation5 + $0x18] sm:$0xff]   ;;  %v927_v16 = vld [vmem:[#allocation5 + $0x50] sm:$0xff]   ;;  %p1021_p4 = scmp.ne.s32.totalorder %s651_s26, %s1020_s20 }
  0x6d   : > { %v923_v12 = vld [vmem:[#allocation5 + $0xa0] sm:$0xff]   ;;  %v926_v15 = vld [vmem:[#allocation5 + $0x98] sm:$0xff]   ;;  %v928_v17 = vld [vmem:[#allocation5 + $0x10] sm:$0xff]  }
  0x6e   : > { %v929_v18 = vld [vmem:[#allocation5 + $0x90] sm:$0xff]   ;;  %v930_v19 = vld [vmem:[#allocation5 + $0x48] sm:$0xff]   ;;  %v933_v22 = vld [vmem:[#allocation5 + $0x40] sm:$0xff]   ;;  %p1022_p5 = pnand %p1021_p4, %p1395_p7 }
  0x6f   : > { %795 = vmatpush3.bf16.msra.mxu0 %v916_v5  ;;  %826 = vmatpush3.bf16.msra.mxu1 %v917_v6  ;;  %v931_v20 = vld [vmem:[#allocation5 + $0x8] sm:$0xff]   ;;  %v319_v23 = vld [vmem:[%s1297_s27 + $0x8] sm:$0xff]  ;;  %v934_v25 = vld [vmem:[#allocation5] sm:$0xff]  }
  0x70   : > { %796 = vmatprep.subr.bf16.mxu0 %v918_v7  ;;  %827 = vmatprep.subr.bf16.mxu1 %v1099_v0  ;;  %v932_v21 = vld [vmem:[#allocation5 + $0x88] sm:$0xff]   ;;  %v322_v24 = vpack.c.bf16 %v319_v23, %v319_v23  ;;  %v935_v27 = vld [vmem:[#allocation5 + $0x80] sm:$0xff]   ;;  %v761_v33 = vld [vmem:[%s1368_s2] ss:$0 sm:$0xff]  ;;  %p1023_p3 = pneg %p1022_p5 }
  0x71   : > { %v318_v26 = vld [vmem:[%s1297_s27] sm:$0xff]  ;;  %v320_v28 = vld [vmem:[%s1297_s27 + $0x10] sm:$0xff]  ;;  %s1101_s27 = smov [#allocation8]  }
  0x72   : > { %555 = vmatprep.mubr.bf16.mxu0 %v322_v24  ;;  %v321_v29 = vpack.c.bf16 %v318_v26, %v318_v26  ;;  %v323_v30 = vpack.c.bf16 %v320_v28, %v320_v28  ;;  %v603_v41 = vld [vmem:[%s1310_s15] sm:$0xff]  ;;  %v786_v56 = vld [vmem:[%s1370_s4] ss:$0 sm:$0xff]  ;;  %s1024_s15 = sshll.u32 %s1101_s27, 4  ;;  %s1025_s15 = int_to_ptr.vmem [resolvable:$false] %s1024_s15 }
  0x73   : > { %797 = vmatpush3.bf16.msra.mxu0 %v919_v8  ;;  %828 = vmatpush3.bf16.msra.mxu1 %v920_v9  ;;  %v787_v58 = vld [vmem:[%s1371_s5] ss:$0 sm:$0xff]  ;;  %s1026_s10 = scalar_lea.vmem %s1025_s15, 256  ;;  %p1027_p1 = scmp.lt.s32.totalorder %s651_s26, %s1025_s15 }
  0x74   : > { %798 = vmatprep.subr.bf16.mxu0 %v921_v10  ;;  %829 = vmatprep.subr.bf16.mxu1 %v1099_v0  ;;  %p1028_p9 = scmp.lt.s32.totalorder %s1026_s10, %s1020_s20 }
  0x76   : > { %p1029_p10 = por %p1028_p9, %p1027_p1 }
  0x77   : > { %799 = vmatpush3.bf16.msra.mxu0 %v922_v11  ;;  %830 = vmatpush3.bf16.msra.mxu1 %v923_v12 }
  0x78   : > { %800 = vmatprep.subr.bf16.mxu0 %v924_v13  ;;  %831 = vmatprep.subr.bf16.mxu1 %v1099_v0  ;;  %p1030_p0 = pnand %p1029_p10, %p1023_p3 }
  0x7b   : > { %801 = vmatpush3.bf16.msra.mxu0 %v925_v14  ;;  %832 = vmatpush3.bf16.msra.mxu1 %v926_v15 }
  0x7c   : > { %802 = vmatprep.subr.bf16.mxu0 %v927_v16  ;;  %833 = vmatprep.subr.bf16.mxu1 %v1099_v0 }
  0x7f   : > { %803 = vmatpush3.bf16.msra.mxu0 %v928_v17  ;;  %834 = vmatpush3.bf16.msra.mxu1 %v929_v18 }
  0x80   : > { %804 = vmatprep.subr.bf16.mxu0 %v930_v19  ;;  %835 = vmatprep.subr.bf16.mxu1 %v1099_v0 }
  0x83   : > { %805 = vmatpush3.bf16.msra.mxu0 %v931_v20  ;;  %836 = vmatpush3.bf16.msra.mxu1 %v932_v21 }
  0x84   : > { %806 = vmatprep.subr.bf16.mxu0 %v933_v22  ;;  %837 = vmatprep.subr.bf16.mxu1 %v1099_v0 }
  0x87   : > { %807 = vmatpush3.bf16.msra.mxu0 %v934_v25  ;;  %838 = vmatpush3.bf16.msra.mxu1 %v935_v27 }
  0x8a   : > { %556 = vmatmul.mubr.bf16.vlgmr.msra.gmra.mxu0 %v321_v29  ;;  %840 = vmatmul.mubr.bf16.vlgmr.msra.gmra.mxu1 %v323_v30 }
 0x14a   : > { %v808_v31 = vpop.f32.mrf.mxu0  ;;  %v597_v32 = vpop.f32.mrf.mxu1 }
 0x14c   : > { %v809_v34 = vpop.f32.mrf.mxu0  ;;  %v841_v36 = vpop.f32.mrf.mxu1 }
 0x14d   : > { %v810_v35 = vadd.f32 %v809_v34, %v808_v31 }
 0x14e   : > { %v811_v37 = vpop.f32.mrf.mxu0  ;;  %v600_v39 = vpop.f32.mrf.mxu1 }
 0x14f   : > { %v558_v38 = vadd.f32 %v810_v35, %v761_v33 }
 0x150   : > { %v812_v40 = vpop.f32.mrf.mxu0  ;;  %v842_v43 = vpop.f32.mrf.mxu1 }
 0x151   : > { %v598_v42 = vadd.f32 %v597_v32, %v558_v38 }
 0x153   : > { %v604_v44 = vadd.f32 %v603_v41, %v598_v42 }
 0x155   : > { %605 = vadd.xlane.f32.xlu0 %v604_v44  ;;  %v607_v45 = vmul.f32 %v604_v44, %v604_v44 }
 0x159   : > { %608 = vadd.xlane.f32.xlu0 %v607_v45 }
 0x1de   : > { %v606_v46 = vpop.xlane.xlu0 %605 }
 0x1df   : > { %v610_v47 = vmul.f32 0.0078125, %v606_v46 }
 0x1e1   : > { %v612_v49 = vmul.f32 %v610_v47, %v610_v47  ;;  %v617_v54 = vsub.f32 %v604_v44, %v610_v47 }
 0x1e2   : > { %v609_v48 = vpop.xlane.xlu0 %608 }
 0x1e3   : > { %v611_v50 = vmul.f32 0.0078125, %v609_v48 }
 0x1e5   : > { %v613_v51 = vsub.f32 %v611_v50, %v612_v49 }
 0x1e7   : > { %v614_v52 = vmax.f32 %v613_v51, 0.0 }
 0x1e9   : > { %v615_v53 = vadd.f32 1e-12, %v614_v52 }
 0x1eb   : > { %936 = vrsqrt.f32 %v615_v53 }
 0x1f8   : > { %v937_v55 = vpop.eup %936 }
 0x1f9   : > { %v618_v57 = vmul.f32 %v937_v55, %v617_v54 }
 0x1fb   : > { %v626_v59 = vmul.f32 %v786_v56, %v618_v57 }
 0x1fd   : > { %v634_v60 = vadd.f32 %v787_v58, %v626_v59 }
 0x1ff   : > { %635 = vst [vmem:[%s316_s18] sm:$0xff] %v634_v60 }
 0x200   : > { %1033 = shalt.err (!%p1030_p0)
}
 0x201   : > { %s1034_s8 = scalar_lea.hbm %s648_s0, 128  ;;  %s1038_s16 = scalar_lea.hbm %s1372_s6, 256 }
 0x202   : > { %p1035_p11 = scmp.ne.s32.totalorder %s648_s0, %s1034_s8  ;;  %p1039_p12 = scmp.lt.s32.totalorder %s648_s0, %s1372_s6 }
 0x203   : > { %p1040_p6 = scmp.lt.s32.totalorder %s1038_s16, %s1034_s8 }
 0x204   : > { %p1036_p13 = pnand %p1035_p11, %p1395_p7 }
 0x205   : > { %p1041_p2 = por %p1040_p6, %p1039_p12 }
 0x206   : > { %p1037_p8 = pneg %p1036_p13 }
 0x208   : > { %p1042_p4 = pnand %p1041_p2, %p1037_p8 }
 0x20a   : > { %1045 = shalt.err (!%p1042_p4)
}
 0x20b   : > { %854 = dma.vmem_to_hbm [thread:$0]  (%p1395_p7), %s651_s26, 128, %s648_s0, %s637_s28  }
 0x20c PF: > { %s662_s29 = sand.u32 1, %s1080_s21   ;;  %p1396_p5 = scmp.ne.s32.totalorder %s1387_s14, 0 }
 0x20d   : > { %p1397_p3 = scmp.ge.s32.totalorder %s1092_s24, 2  ;;  %s663_s9 = scalar_lea.sflag [#allocation4], %s662_s29 }
 0x20f   : > { %p868_p1 = pnand %p1397_p3, %p1396_p5 }
 0x211   : > { %p869_p9 = pneg %p868_p1 }
 0x213   : > { %1075 = dma.done.wait (%p869_p9), %s663_s9, 128  }
 0x214   : > { %1077 = vsyncadd (%p869_p9), %s663_s9, 4294967168  ;;  %s1398_s17 = sld [smem:[#allocation13_spill]]  ;;  %p20_p10 = scmp.ge.s32.totalorder %s1158_s25, 4  }
 0x215   : > { %s1399_s23 = sld [smem:[#allocation14_spill]]  ;;  %s1400_s21 = smov %s1084_s22 }
 0x216   : > { %s1402_s24 = smov %s1158_s25  ;;  %22 = sbr.rel (!%p20_p10) target bundleno = 8 (0x8), region = 104 }
 0x21a   : > { %s1401_s22 = smov %s1398_s17 }
 0x21b   :  { %668 = vsyncpa [#allocation3], 1 }
 0x21c   :  { %670 = vsyncpa [#allocation3 + $0x1], 1 }
 0x21d   :  { %671 = vsyncpa [#allocation6], 1 }
 0x21e   :  { %672 = vsyncpa [#allocation4], 1 }
 0x21f   :  { %674 = vsyncpa [#allocation4 + $0x1], 1 }

// kernel: tpu_custom_call.1
= control target key start
LH: loop header
LB: loop body
LE: loop exit
PB: predicated region body
PF: predicated region fallthrough
CT: control target
= control target key end

     0   :  { %s1366_s0 = inlined_call_operand.hbm [shape: f32[16,384], index: 0, kind: input, shape index: {}]   ;;  %s1367_s1 = inlined_call_operand.hbm [shape: bf16[384,128], index: 1, kind: input, shape index: {}]   ;;  %s1368_s2 = inlined_call_operand.vmem [shape: f32[1,128], index: 2, kind: input, shape index: {}]   ;;  %s1369_s3 = inlined_call_operand.hbm [shape: f32[16,128], index: 3, kind: input, shape index: {}]   ;;  %s1370_s4 = inlined_call_operand.vmem [shape: f32[1,128], index: 4, kind: input, shape index: {}]   ;;  %s1371_s5 = inlined_call_operand.vmem [shape: f32[1,128], index: 5, kind: input, shape index: {}]   ;;  %s1372_s6 = inlined_call_operand.hbm [shape: f32[16,128], index: 6, kind: output, shape index: {}]  }
   0x1   :  { %1379 = sst [smem:[#allocation15_spill]] %s1366_s0 }
   0x2   :  { %11 = vsyncpa [#allocation3], 0 }
   0x3   :  { %13 = vsyncpa [#allocation3 + $0x1], 0 }
   0x4   :  { %14 = vsyncpa [#allocation6], 0 }
   0x5   :  { %15 = vsyncpa [#allocation4], 0 }
   0x6   :  { %17 = vsyncpa [#allocation4 + $0x1], 0  ;;  %s1137_s21 = smov 0   ;;  %s1139_s22 = smov 0  }
   0x7   :  { %s1141_s23 = smov 0   ;;  %s1143_s24 = smov 0  }
   0x8 LB: > { %1380 = sst [smem:[#allocation13_spill]] %s1088_s23  ;;  %s1158_s25 = sadd.s32 1, %s1092_s24   ;;  %s1092_s24 = sphi %s1143_s24, %s1402_s24   ;;  %s1088_s23 = sphi %s1141_s23, %s1399_s23   ;;  %s1084_s22 = sphi %s1139_s22, %s1401_s22   ;;  %s1080_s21 = sphi %s1137_s21, %s1400_s21  }
   0x9   : > { %s30_s26 = sadd.s32 1, %s1088_s23  ;;  %s27_s27 = ssub.s32 %s1092_s24, %s1158_s25 }
   0xa   : > { %p1373_p0 = scmp.ne.s32.totalorder %s1088_s23, %s1084_s22  ;;  %p28_p1 = scmp.eq.s32.totalorder %s27_s27, 0 }
   0xb   : > { %p38_p2 = scmp.eq.s32.totalorder %s1092_s24, 0  ;;  %p872_p4 = scmp.lt.s32.totalorder %s1092_s24, 2 }
   0xc   : > { %s1169_s28 = scalar_select %p28_p1, %s1088_s23, %s30_s26  }
   0xd   : > { %p39_p5 = por %p38_p2, %p1373_p0  ;;  %s225_s29 = sand.u32 1, %s1092_s24  }
   0xe   : > { %1381 = sst [smem:[#allocation14_spill]] %s1169_s28  ;;  %s227_s30 = sand.u32 1, %s1088_s23  }
   0xf   : > { %s843_s7 = smul.u32 24, %s227_s30  ;;  %p1178_p6 = pnand %p872_p4, %p39_p5 }
  0x10   : > { %s844_s9 = smul.u32 384, %s1092_s24  ;;  %s1383_s0 = sld [smem:[#allocation15_spill]] }
  0x11   : > { %s229_s13 = scalar_lea.vmem [#allocation2], %s843_s7  ;;  %s1188_s15 = scalar_lea.sflag [#allocation3], %s225_s29 }
  0x12   : > { %s237_s14 = sshll.u32 %s229_s13, 4  ;;  %p1375_p8 = pneg %p1178_p6  ;;  %s238_s14 = int_to_ptr.vmem [resolvable:$true] %s237_s14 }
  0x16   : > { %s1186_s12 = scalar_lea.hbm %s1383_s0, %s844_s9  ;;  %s943_s19 = scalar_lea.hbm %s1383_s0, 768 }
  0x17   : > { %s938_s16 = scalar_lea.hbm %s1186_s12, 384  ;;  %p944_p11 = scmp.lt.s32.totalorder %s1186_s12, %s1383_s0 }
  0x18   : > { %p939_p7 = scmp.ne.s32.totalorder %s1186_s12, %s938_s16  ;;  %p945_p12 = scmp.lt.s32.totalorder %s943_s19, %s938_s16 }
  0x1a   : > { %p941_p9 = pnand %p1375_p8, %p939_p7  ;;  %p946_p13 = por %p945_p12, %p944_p11 }
  0x1c   : > { %p942_p10 = pneg %p941_p9 }
  0x1e   : > { %p947_p1 = pnand %p946_p13, %p942_p10 }
  0x20   : > { %950 = shalt.err (!%p947_p1)
}
  0x21   : > { %s951_s27 = scalar_lea.vmem %s238_s14, 384  ;;  %s1094_s29 = smov [#allocation2]  }
  0x22   : > { %p952_p2 = scmp.ne.s32.totalorder %s238_s14, %s951_s27  ;;  %s956_s7 = sshll.u32 %s1094_s29, 4  ;;  %s957_s7 = int_to_ptr.vmem [resolvable:$false] %s956_s7 }
  0x23   : > { %s958_s9 = scalar_lea.vmem %s957_s7, 768  ;;  %p959_p7 = scmp.lt.s32.totalorder %s238_s14, %s957_s7 }
  0x24   : > { %p954_p4 = pnand %p952_p2, %p1375_p8  ;;  %p960_p9 = scmp.lt.s32.totalorder %s958_s9, %s951_s27 }
  0x26   : > { %p955_p5 = pneg %p954_p4  ;;  %p961_p3 = por %p960_p9, %p959_p7 }
  0x28   : > { %p962_p0 = pnand %p961_p3, %p955_p5 }
  0x2a   : > { %965 = shalt.err (!%p962_p0)
}
  0x2b   : > { %863 = dma.hbm_to_vmem [thread:$0]  (!%p1178_p6), %s1186_s12, 384, %s238_s14, %s1188_s15  }
  0x2c   : > { %s1212_s10 = sadd.s32 4294967295, %s1092_s24   ;;  %s750_s11 = sadd.s32 4294967294, %s1092_s24  }
  0x2d   : > { %p43_p0 = scmp.ne.s32.totalorder %s1084_s22, %s1080_s21  ;;  %p1374_p3 = scmp.eq.s32.totalorder %s1212_s10, 0 }
  0x2e   : > { %p177_p10 = scmp.eq.s32.totalorder %s1212_s10, 1  ;;  %p183_p11 = scmp.eq.s32.totalorder %s750_s11, 1 }
  0x2f   : > { %p1221_p12 = por %p1374_p3, %p43_p0  ;;  %p751_p13 = scmp.ge.s32.totalorder %s1092_s24, 1 }
  0x30   : > { %p1385_p1 = scmp.ne.s32.totalorder %s1088_s23, %s1084_s22  ;;  %p1233_p4 = por %p183_p11, %p43_p0 }
  0x31   : > { %s1384_s13 = scalar_select %p1221_p12, 1, 0 }
  0x32   : > { %p1229_p2 = por %p177_p10, %p1385_p1  ;;  %p190_p5 = scmp.lt.s32.totalorder %s1092_s24, 3 }
  0x33   : > { %s1387_s14 = scalar_select %p1233_p4, 1, 0 }
  0x34   : > { %s1386_s12 = scalar_select %p1229_p2, 1, 0 }
  0x35   : > { %p1238_p7 = pnand %p751_p13, %p190_p5  ;;  %s1095_s17 = smov [#allocation5]  }
  0x36   : > { %s202_s18 = sshll.u32 %s1095_s17, 4  ;;  %s755_s19 = sshll.u32 %s227_s30, 3  ;;  %s203_s18 = int_to_ptr.vmem [resolvable:$true] %s202_s18 }
  0x37   : > { %p856_p9 = pneg %p1238_p7  ;;  %s756_s20 = sshll.u32 %s1092_s24, 7 }
  0x38   : > { %s1256_s7 = scalar_lea.hbm %s1369_s3, %s756_s20  ;;  %s248_s9 = scalar_lea.vmem [#allocation7], %s755_s19 }
  0x39   : > { %p1249_p10 = pnand %p856_p9, %p1374_p3  ;;  %s255_s11 = sshll.u32 %s248_s9, 4  ;;  %s1258_s11 = int_to_ptr.vmem [resolvable:$true] %s255_s11 }
  0x3a   : > { %s977_s17 = scalar_lea.vmem %s203_s18, 3072  ;;  %p985_p5 = scmp.lt.s32.totalorder %s203_s18, %s203_s18 }
  0x3b   : > { %p968_p0 = pneg %p1249_p10  ;;  %p978_p11 = scmp.ne.s32.totalorder %s203_s18, %s977_s17 }
  0x3c   : > { %p986_p9 = scmp.lt.s32.totalorder %s977_s17, %s977_s17 }
  0x3d   : > { %p980_p13 = pnand %p978_p11, %p968_p0 }
  0x3e   : > { %p987_p3 = por %p986_p9, %p985_p5 }
  0x3f   : > { %p981_p1 = pneg %p980_p13 }
  0x41   : > { %p988_p8 = pnand %p987_p3, %p981_p1 }
  0x43   : > { %991 = shalt.err (!%p988_p8)
}
  0x44   : > { %s1096_s30 = smov 64   ;;  %s1097_s19 = smov 4  }
  0x45   : > { %859 = dma.hbm_to_vmem [thread:$0]  (!%p1249_p10), %s1367_s1, 3072, %s203_s18, [#allocation6], %s1096_s30, %s1096_s30, %s1097_s19  }
  0x46   : > { %s992_s29 = scalar_lea.hbm %s1256_s7, 128  ;;  %p1390_p11 = pneg %p1178_p6 }
  0x47   : > { %p993_p0 = scmp.ne.s32.totalorder %s1256_s7, %s992_s29  ;;  %s997_s0 = scalar_lea.hbm %s1369_s3, 256 }
  0x48   : > { %p998_p8 = scmp.lt.s32.totalorder %s1256_s7, %s1369_s3  ;;  %p999_p3 = scmp.lt.s32.totalorder %s997_s0, %s992_s29 }
  0x49   : > { %p995_p13 = pnand %p993_p0, %p1390_p11 }
  0x4a   : > { %p1000_p1 = por %p999_p3, %p998_p8 }
  0x4b   : > { %p996_p5 = pneg %p995_p13 }
  0x4d   : > { %p1001_p9 = pnand %p1000_p1, %p996_p5 }
  0x4f   : > { %1004 = shalt.err (!%p1001_p9)
}
  0x50   : > { %s1005_s18 = scalar_lea.vmem %s1258_s11, 128  ;;  %p1391_p0 = pmov %p1390_p11 }
  0x51   : > { %p1006_p10 = scmp.ne.s32.totalorder %s1258_s11, %s1005_s18  ;;  %s1098_s26 = smov [#allocation7]  }
  0x52   : > { %s1010_s30 = sshll.u32 %s1098_s26, 4  ;;  %s1011_s30 = int_to_ptr.vmem [resolvable:$false] %s1010_s30 }
  0x53   : > { %p1008_p11 = pnand %p1006_p10, %p1391_p0  ;;  %s1012_s19 = scalar_lea.vmem %s1011_s30, 256 }
  0x54   : > { %p1013_p4 = scmp.lt.s32.totalorder %s1258_s11, %s1011_s30  ;;  %p1014_p2 = scmp.lt.s32.totalorder %s1012_s19, %s1005_s18 }
  0x55   : > { %p1009_p13 = pneg %p1008_p11 }
  0x56   : > { %p1015_p12 = por %p1014_p2, %p1013_p4 }
  0x58   : > { %p1016_p8 = pnand %p1015_p12, %p1009_p13 }
  0x5a   : > { %1019 = shalt.err (!%p1016_p8)
}
  0x5b   : > { %866 = dma.hbm_to_vmem [thread:$0]  (!%p1178_p6), %s1256_s7, 128, %s1258_s11, %s1188_s15  }
  0x5c   : > { %264 = sbr.rel (%p1238_p7) target bundleno = 524 (0x20c), region = 44  ;;  %s266_s0 = sand.u32 (!%p1238_p7), 1, %s1212_s10  }
  0x5d   : > { %s1294_s23 = sand.u32 (!%p1238_p7), 1, %s1084_s22   ;;  %s267_s20 = scalar_lea.sflag (!%p1238_p7), [#allocation3], %s266_s0 }
  0x5e   : > { %s845_s28 = smul.u32 (!%p1238_p7), 24, %s1294_s23  ;;  %p1392_p12 = scmp.ne.s32.totalorder (!%p1238_p7), %s1384_s13, 0 }
  0x60   : > { %s1297_s27 = scalar_lea.vmem (!%p1238_p7), [#allocation2], %s845_s28 }
  0x61   : > { %1063 = dma.done.wait (%p1392_p12), %s267_s20, 384  }
  0x62   : > { %1065 = vsyncadd (%p1392_p12), %s267_s20, 4294966912  ;;  %p1393_p6 = scmp.eq.s32.totalorder %s1212_s10, 0 }
  0x64   : > { %1067 = dma.done.wait (%p1393_p6), [#allocation6], 3072   ;;  %p1394_p2 = pmov %p1393_p6 }
  0x65   : > { %s759_s8 = sshll.u32 %s1294_s23, 3 }
  0x66   : > { %1069 = vsyncadd (%p1394_p2), [#allocation6], 4294964224  ;;  %s1310_s15 = scalar_lea.vmem [#allocation7], %s759_s8 }
  0x67   : > { %1071 = dma.done.wait (%p1392_p12), %s267_s20, 128  }
  0x68   : > { %1073 = vsyncadd (%p1392_p12), %s267_s20, 4294967168  ;;  %v1099_v0 = vmov 0.0   ;;  %vm1100_vm0 = vmmov 0   ;;  %v912_v1 = vld [vmem:[#allocation5 + $0x78] sm:$0xff]   ;;  %v915_v4 = vld [vmem:[#allocation5 + $0x70] sm:$0xff]   ;;  %s789_s17 = sshll.u32 %s1212_s10, 7 }
  0x69   : > { %823 = vmatprep.subr.bf16.mxu1 %v1099_v0  ;;  %839 = vmatprep.mubr.msk.bf16.mxu1 %vm1100_vm0, %v1099_v0  ;;  %v913_v2 = vld [vmem:[#allocation5 + $0x38] sm:$0xff]   ;;  %v916_v5 = vld [vmem:[#allocation5 + $0x30] sm:$0xff]   ;;  %v918_v7 = vld [vmem:[#allocation5 + $0x68] sm:$0xff]   ;;  %s316_s18 = scalar_lea.vmem [#allocation8], %s759_s8  ;;  %s648_s0 = scalar_lea.hbm %s1372_s6, %s789_s17 }
  0x6a   : > { %792 = vmatprep.subr.bf16.mxu0 %v912_v1  ;;  %v914_v3 = vld [vmem:[#allocation5 + $0xb8] sm:$0xff]   ;;  %v917_v6 = vld [vmem:[#allocation5 + $0xb0] sm:$0xff]   ;;  %v919_v8 = vld [vmem:[#allocation5 + $0x28] sm:$0xff]   ;;  %s650_s26 = sshll.u32 %s316_s18, 4  ;;  %s637_s28 = scalar_lea.sflag [#allocation4], %s1294_s23  ;;  %s651_s26 = int_to_ptr.vmem [resolvable:$true] %s650_s26 }
  0x6b   : > { %793 = vmatpush3.bf16.msra.mxu0 %v913_v2  ;;  %824 = vmatpush3.bf16.msra.mxu1 %v914_v3  ;;  %v920_v9 = vld [vmem:[#allocation5 + $0xa8] sm:$0xff]   ;;  %v921_v10 = vld [vmem:[#allocation5 + $0x60] sm:$0xff]   ;;  %v924_v13 = vld [vmem:[#allocation5 + $0x58] sm:$0xff]   ;;  %s1020_s20 = scalar_lea.vmem %s651_s26, 128  ;;  %p1395_p7 = scmp.ne.s32.totalorder %s1386_s12, 0 }
  0x6c   : > { %794 = vmatprep.subr.bf16.mxu0 %v915_v4  ;;  %825 = vmatprep.subr.bf16.mxu1 %v1099_v0  ;;  %v922_v11 = vld [vmem:[#allocation5 + $0x20] sm:$0xff]   ;;  %v925_v14 = vld [vmem:[#allocation5 + $0x18] sm:$0xff]   ;;  %v927_v16 = vld [vmem:[#allocation5 + $0x50] sm:$0xff]   ;;  %p1021_p4 = scmp.ne.s32.totalorder %s651_s26, %s1020_s20 }
  0x6d   : > { %v923_v12 = vld [vmem:[#allocation5 + $0xa0] sm:$0xff]   ;;  %v926_v15 = vld [vmem:[#allocation5 + $0x98] sm:$0xff]   ;;  %v928_v17 = vld [vmem:[#allocation5 + $0x10] sm:$0xff]  }
  0x6e   : > { %v929_v18 = vld [vmem:[#allocation5 + $0x90] sm:$0xff]   ;;  %v930_v19 = vld [vmem:[#allocation5 + $0x48] sm:$0xff]   ;;  %v933_v22 = vld [vmem:[#allocation5 + $0x40] sm:$0xff]   ;;  %p1022_p5 = pnand %p1021_p4, %p1395_p7 }
  0x6f   : > { %795 = vmatpush3.bf16.msra.mxu0 %v916_v5  ;;  %826 = vmatpush3.bf16.msra.mxu1 %v917_v6  ;;  %v931_v20 = vld [vmem:[#allocation5 + $0x8] sm:$0xff]   ;;  %v319_v23 = vld [vmem:[%s1297_s27 + $0x8] sm:$0xff]  ;;  %v934_v25 = vld [vmem:[#allocation5] sm:$0xff]  }
  0x70   : > { %796 = vmatprep.subr.bf16.mxu0 %v918_v7  ;;  %827 = vmatprep.subr.bf16.mxu1 %v1099_v0  ;;  %v932_v21 = vld [vmem:[#allocation5 + $0x88] sm:$0xff]   ;;  %v322_v24 = vpack.c.bf16 %v319_v23, %v319_v23  ;;  %v935_v27 = vld [vmem:[#allocation5 + $0x80] sm:$0xff]   ;;  %v761_v33 = vld [vmem:[%s1368_s2] ss:$0 sm:$0xff]  ;;  %p1023_p3 = pneg %p1022_p5 }
  0x71   : > { %v318_v26 = vld [vmem:[%s1297_s27] sm:$0xff]  ;;  %v320_v28 = vld [vmem:[%s1297_s27 + $0x10] sm:$0xff]  ;;  %s1101_s27 = smov [#allocation8]  }
  0x72   : > { %555 = vmatprep.mubr.bf16.mxu0 %v322_v24  ;;  %v321_v29 = vpack.c.bf16 %v318_v26, %v318_v26  ;;  %v323_v30 = vpack.c.bf16 %v320_v28, %v320_v28  ;;  %v603_v41 = vld [vmem:[%s1310_s15] sm:$0xff]  ;;  %v786_v56 = vld [vmem:[%s1370_s4] ss:$0 sm:$0xff]  ;;  %s1024_s15 = sshll.u32 %s1101_s27, 4  ;;  %s1025_s15 = int_to_ptr.vmem [resolvable:$false] %s1024_s15 }
  0x73   : > { %797 = vmatpush3.bf16.msra.mxu0 %v919_v8  ;;  %828 = vmatpush3.bf16.msra.mxu1 %v920_v9  ;;  %v787_v58 = vld [vmem:[%s1371_s5] ss:$0 sm:$0xff]  ;;  %s1026_s10 = scalar_lea.vmem %s1025_s15, 256  ;;  %p1027_p1 = scmp.lt.s32.totalorder %s651_s26, %s1025_s15 }
  0x74   : > { %798 = vmatprep.subr.bf16.mxu0 %v921_v10  ;;  %829 = vmatprep.subr.bf16.mxu1 %v1099_v0  ;;  %p1028_p9 = scmp.lt.s32.totalorder %s1026_s10, %s1020_s20 }
  0x76   : > { %p1029_p10 = por %p1028_p9, %p1027_p1 }
  0x77   : > { %799 = vmatpush3.bf16.msra.mxu0 %v922_v11  ;;  %830 = vmatpush3.bf16.msra.mxu1 %v923_v12 }
  0x78   : > { %800 = vmatprep.subr.bf16.mxu0 %v924_v13  ;;  %831 = vmatprep.subr.bf16.mxu1 %v1099_v0  ;;  %p1030_p0 = pnand %p1029_p10, %p1023_p3 }
  0x7b   : > { %801 = vmatpush3.bf16.msra.mxu0 %v925_v14  ;;  %832 = vmatpush3.bf16.msra.mxu1 %v926_v15 }
  0x7c   : > { %802 = vmatprep.subr.bf16.mxu0 %v927_v16  ;;  %833 = vmatprep.subr.bf16.mxu1 %v1099_v0 }
  0x7f   : > { %803 = vmatpush3.bf16.msra.mxu0 %v928_v17  ;;  %834 = vmatpush3.bf16.msra.mxu1 %v929_v18 }
  0x80   : > { %804 = vmatprep.subr.bf16.mxu0 %v930_v19  ;;  %835 = vmatprep.subr.bf16.mxu1 %v1099_v0 }
  0x83   : > { %805 = vmatpush3.bf16.msra.mxu0 %v931_v20  ;;  %836 = vmatpush3.bf16.msra.mxu1 %v932_v21 }
  0x84   : > { %806 = vmatprep.subr.bf16.mxu0 %v933_v22  ;;  %837 = vmatprep.subr.bf16.mxu1 %v1099_v0 }
  0x87   : > { %807 = vmatpush3.bf16.msra.mxu0 %v934_v25  ;;  %838 = vmatpush3.bf16.msra.mxu1 %v935_v27 }
  0x8a   : > { %556 = vmatmul.mubr.bf16.vlgmr.msra.gmra.mxu0 %v321_v29  ;;  %840 = vmatmul.mubr.bf16.vlgmr.msra.gmra.mxu1 %v323_v30 }
 0x14a   : > { %v808_v31 = vpop.f32.mrf.mxu0  ;;  %v597_v32 = vpop.f32.mrf.mxu1 }
 0x14c   : > { %v809_v34 = vpop.f32.mrf.mxu0  ;;  %v841_v36 = vpop.f32.mrf.mxu1 }
 0x14d   : > { %v810_v35 = vadd.f32 %v809_v34, %v808_v31 }
 0x14e   : > { %v811_v37 = vpop.f32.mrf.mxu0  ;;  %v600_v39 = vpop.f32.mrf.mxu1 }
 0x14f   : > { %v558_v38 = vadd.f32 %v810_v35, %v761_v33 }
 0x150   : > { %v812_v40 = vpop.f32.mrf.mxu0  ;;  %v842_v43 = vpop.f32.mrf.mxu1 }
 0x151   : > { %v598_v42 = vadd.f32 %v597_v32, %v558_v38 }
 0x153   : > { %v604_v44 = vadd.f32 %v603_v41, %v598_v42 }
 0x155   : > { %605 = vadd.xlane.f32.xlu0 %v604_v44  ;;  %v607_v45 = vmul.f32 %v604_v44, %v604_v44 }
 0x159   : > { %608 = vadd.xlane.f32.xlu0 %v607_v45 }
 0x1de   : > { %v606_v46 = vpop.xlane.xlu0 %605 }
 0x1df   : > { %v610_v47 = vmul.f32 0.0078125, %v606_v46 }
 0x1e1   : > { %v612_v49 = vmul.f32 %v610_v47, %v610_v47  ;;  %v617_v54 = vsub.f32 %v604_v44, %v610_v47 }
 0x1e2   : > { %v609_v48 = vpop.xlane.xlu0 %608 }
 0x1e3   : > { %v611_v50 = vmul.f32 0.0078125, %v609_v48 }
 0x1e5   : > { %v613_v51 = vsub.f32 %v611_v50, %v612_v49 }
 0x1e7   : > { %v614_v52 = vmax.f32 %v613_v51, 0.0 }
 0x1e9   : > { %v615_v53 = vadd.f32 1e-12, %v614_v52 }
 0x1eb   : > { %936 = vrsqrt.f32 %v615_v53 }
 0x1f8   : > { %v937_v55 = vpop.eup %936 }
 0x1f9   : > { %v618_v57 = vmul.f32 %v937_v55, %v617_v54 }
 0x1fb   : > { %v626_v59 = vmul.f32 %v786_v56, %v618_v57 }
 0x1fd   : > { %v634_v60 = vadd.f32 %v787_v58, %v626_v59 }
 0x1ff   : > { %635 = vst [vmem:[%s316_s18] sm:$0xff] %v634_v60 }
 0x200   : > { %1033 = shalt.err (!%p1030_p0)
}
 0x201   : > { %s1034_s8 = scalar_lea.hbm %s648_s0, 128  ;;  %s1038_s16 = scalar_lea.hbm %s1372_s6, 256 }
 0x202   : > { %p1035_p11 = scmp.ne.s32.totalorder %s648_s0, %s1034_s8  ;;  %p1039_p12 = scmp.lt.s32.totalorder %s648_s0, %s1372_s6 }
 0x203   : > { %p1040_p6 = scmp.lt.s32.totalorder %s1038_s16, %s1034_s8 }
 0x204   : > { %p1036_p13 = pnand %p1035_p11, %p1395_p7 }
 0x205   : > { %p1041_p2 = por %p1040_p6, %p1039_p12 }
 0x206   : > { %p1037_p8 = pneg %p1036_p13 }
 0x208   : > { %p1042_p4 = pnand %p1041_p2, %p1037_p8 }
 0x20a   : > { %1045 = shalt.err (!%p1042_p4)
}
 0x20b   : > { %854 = dma.vmem_to_hbm [thread:$0]  (%p1395_p7), %s651_s26, 128, %s648_s0, %s637_s28  }
 0x20c PF: > { %s662_s29 = sand.u32 1, %s1080_s21   ;;  %p1396_p5 = scmp.ne.s32.totalorder %s1387_s14, 0 }
 0x20d   : > { %p1397_p3 = scmp.ge.s32.totalorder %s1092_s24, 2  ;;  %s663_s9 = scalar_lea.sflag [#allocation4], %s662_s29 }
 0x20f   : > { %p868_p1 = pnand %p1397_p3, %p1396_p5 }
 0x211   : > { %p869_p9 = pneg %p868_p1 }
 0x213   : > { %1075 = dma.done.wait (%p869_p9), %s663_s9, 128  }
 0x214   : > { %1077 = vsyncadd (%p869_p9), %s663_s9, 4294967168  ;;  %s1398_s17 = sld [smem:[#allocation13_spill]]  ;;  %p20_p10 = scmp.ge.s32.totalorder %s1158_s25, 4  }
 0x215   : > { %s1399_s23 = sld [smem:[#allocation14_spill]]  ;;  %s1400_s21 = smov %s1084_s22 }
 0x216   : > { %s1402_s24 = smov %s1158_s25  ;;  %22 = sbr.rel (!%p20_p10) target bundleno = 8 (0x8), region = 104 }
 0x21a   : > { %s1401_s22 = smov %s1398_s17 }
 0x21b   :  { %668 = vsyncpa [#allocation3], 1 }
 0x21c   :  { %670 = vsyncpa [#allocation3 + $0x1], 1 }
 0x21d   :  { %671 = vsyncpa [#allocation6], 1 }
 0x21e   :  { %672 = vsyncpa [#allocation4], 1 }
 0x21f   :  { %674 = vsyncpa [#allocation4 + $0x1], 1 }

</bundles_post_ra>
